<compile_context>
chip_gen: v5e
topology: v5e:2x2
jax: 0.10.0
libtpu: 0.0.40
codegen_flags: <defaults>
</compile_context>

<pallas_src>
import functools

import jax
import jax.numpy as jnp
from jax.experimental import pallas as pl
from jax.experimental.pallas import tpu as pltpu


def _gelu_tanh(x):
    # OpenAI / SwissArmyTransformer gelu_impl (kept in f32 inside the kernel).
    return 0.5 * x * (1.0 + jnp.tanh(0.7978845608028654 * x * (1.0 + 0.044715 * x * x)))


def _round_up(x, m):
    return ((x + m - 1) // m) * m


def _cdiv(a, b):
    return (a + b - 1) // b


def _pick_tile(total, want, mult):
    """Largest tile <= want that divides `total` and is a multiple of `mult` (fallback: total)."""
    want = min(want, total)
    t = (want // mult) * mult
    while t >= mult:
        if total % t == 0:
            return t
        t -= mult
    return total


def _hw_profile():
    """(vmem_capacity_bytes, device_kind_lowercase, multi_tensorcore) — all defensively derived."""
    kind = ""
    try:
        kind = (jax.devices()[0].device_kind or "").lower()
    except Exception:
        pass
    cap = None
    get_info = getattr(pltpu, "get_tpu_info", None)
    if get_info is not None:
        try:
            cap = int(getattr(get_info(), "vmem_capacity_bytes", 0) or 0) or None
        except Exception:
            cap = None
    if cap is None:
        if "v7" in kind:
            cap = 64 * 1024 * 1024
        elif "v5" in kind or "v6" in kind:
            cap = 128 * 1024 * 1024
        else:
            cap = 64 * 1024 * 1024  # conservative unknown-hardware default
    multi_core = ("v7" in kind) or (cap <= 80 * 1024 * 1024 and "v5" not in kind and "v6" not in kind)
    return cap, kind, multi_core


def _mlp_kernel(x_ref, w1_ref, b1_ref, w2_ref, b2_ref, o_ref, *scratch, acc_in_out):
    # x_ref:(tm,H)  w1_ref:(H,tk)  b1_ref:(1,tk) f32  w2_ref:(tk,H)  b2_ref:(1,H) f32
    # o_ref:(tm,H); acc either o_ref itself (f32 output) or an f32 VMEM scratch.
    acc_ref = o_ref if acc_in_out else scratch[0]
    k = pl.program_id(1)

    @pl.when(k == 0)
    def _init():
        # Fold the second bias into the accumulator init (saves a (tm,H) VPU add at the end).
        acc_ref[...] = jnp.broadcast_to(b2_ref[...], acc_ref.shape).astype(acc_ref.dtype)

    # dense_h_to_4h on this 4H-slice: (tm,H) @ (H,tk) -> (tm,tk), f32 MXU accumulation.
    h = jnp.dot(x_ref[...], w1_ref[...], preferred_element_type=jnp.float32)
    # Bias + gelu in f32 (VPU/EUP).
    h = _gelu_tanh(h + b1_ref[...])

    # dense_4h_to_h partial sum: (tm,tk) @ (tk,H) -> (tm,H), accumulate in f32.
    # Intentional precision choice: the activation is quantized to the weight dtype (bf16) for the MXU.
    acc_ref[...] += jnp.dot(h.astype(w2_ref.dtype), w2_ref[...],
                            preferred_element_type=jnp.float32)

    if not acc_in_out:
        @pl.when(k == pl.num_programs(1) - 1)
        def _finalize():
            o_ref[...] = acc_ref[...].astype(o_ref.dtype)


@functools.partial(jax.jit, static_argnames=("tm", "tk", "compute_dtype"))
def mlp_forward(hidden_states, w1, b1, w2, b2, *, tm=None, tk=None, compute_dtype=jnp.bfloat16):
    # hidden_states: [B, S, H]; w1:[H, I], b1:[1|I], w2:[I, H], b2:[1|H]
    B, S, H = hidden_states.shape
    I = w1.shape[1]
    M = B * S
    out_dtype = hidden_states.dtype

    cdt = jnp.dtype(compute_dtype)
    cdt_size = cdt.itemsize
    out_size = jnp.dtype(out_dtype).itemsize
    sub = 16 if cdt == jnp.dtype(jnp.bfloat16) else 8

    # ---- generation-aware budgets & default tile targets ------------------------------------
    vmem_cap, kind, multi_core = _hw_profile()
    budget = int(vmem_cap * 0.80)          # ~102 MiB on v5e/v6e, ~51 MiB on v7x

    if tm is None:
        tm_want = 768 if "v6" in kind else 512      # v6e needs the most intensity; v5e/v7x 512
    else:
        tm_want = tm
    if tk is None:
        tk_want = 1024 if "v6" in kind else 512
    else:
        tk_want = tk
    tm_want = max(int(tm_want), sub)
    tk_want = max(int(tk_want), 128)

    # ---- operands ----------------------------------------------------------------------------
    # Cast matmul operands to the compute dtype (no-op if the caller pre-cast the weights once at
    # load time, which is the recommended path for weight-stationary inference).  Biases stay f32.
    x = hidden_states.reshape(M, H).astype(cdt)
    w1c = w1.astype(cdt)
    w2c = w2.astype(cdt)
    b1f = b1.reshape(1, I).astype(jnp.float32)
    b2f = b2.reshape(1, H).astype(jnp.float32)

    # Pad the inner (4H) dim to a multiple of 128 so a lane-aligned tk always exists.
    # Zero-padded columns give gelu(0)=0 and zero-padded w2 rows, so they contribute nothing.
    I_pad = _round_up(I, 128)
    if I_pad != I:
        w1c = jnp.pad(w1c, ((0, 0), (0, I_pad - I)))
        b1f = jnp.pad(b1f, ((0, 0), (0, I_pad - I)))
        w2c = jnp.pad(w2c, ((0, I_pad - I), (0, 0)))

    # ---- VMEM footprint model (double-buffered streamed tiles + optional f32 accumulator) -----
    acc_in_out = (jnp.dtype(out_dtype) == jnp.float32)

    def est_bytes(tm_, tk_, w_bufs=2):
        e = (2 * tm_ * H * cdt_size            # x tiles
             + w_bufs * H * tk_ * cdt_size     # w1 tiles
             + w_bufs * 8 * tk_ * 4            # b1 tiles (f32, sublane-padded)
             + w_bufs * tk_ * H * cdt_size     # w2 tiles
             + 2 * 8 * H * 4                   # b2 (f32, sublane-padded)
             + 2 * tm_ * H * out_size)         # out tiles
        if not acc_in_out:
            e += tm_ * H * 4                   # separate f32 accumulator scratch
        return e

    # ---- token-tile selection (padding-aware; >=2 tiles on 2-TensorCore parts) ----------------
    def pick_tm(target):
        n = max(1, _cdiv(M, target))
        if multi_core and n == 1 and M > sub:
            n = 2                               # feed both TensorCores via the "parallel" M axis
        return n, max(sub, _round_up(_cdiv(M, n), sub))

    n_m, tm_eff = pick_tm(tm_want)

    # ---- reduction-tile selection with VMEM fit (shrink tk first, then tm) --------------------
    tk_eff = _pick_tile(I_pad, tk_want, 128)
    while est_bytes(tm_eff, tk_eff) > budget and tk_eff > 128:
        new_tk = _pick_tile(I_pad, max(128, tk_eff // 2), 128)
        if new_tk >= tk_eff:
            break
        tk_eff = new_tk
    while est_bytes(tm_eff, tk_eff) > budget and tm_eff > sub:
        n_m, tm_eff = pick_tm(max(sub, _round_up(tm_eff // 2, sub)))

    M_pad = tm_eff * n_m
    if M_pad != M:
        x = jnp.pad(x, ((0, M_pad - M), (0, 0)))

    k_steps = I_pad // tk_eff
    grid = (n_m, k_steps)

    # Deeper weight buffering only when there are enough reduction steps and it fits the budget.
    w_bufs = 2
    if k_steps >= 3 and est_bytes(tm_eff, tk_eff, w_bufs=3) <= budget:
        w_bufs = 3
    w_pipe = {} if w_bufs == 2 else {"pipeline_mode": pl.Buffered(w_bufs)}

    est = est_bytes(tm_eff, tk_eff, w_bufs)
    vmem_limit = max(int(1.2 * est), 32 * 1024 * 1024)
    vmem_limit = min(vmem_limit, budget)
    vmem_limit = max(vmem_limit, est)      # never budget below the real footprint

    # ---- advisory cost estimate (honest about the weight re-stream per token tile) ------------
    flops = 2 * M_pad * H * I_pad * 2                      # two matmuls
    transcendentals = M_pad * I_pad                        # one tanh per intermediate element
    bytes_accessed = (
        M_pad * H * cdt_size                               # x (read once per token tile)
        + n_m * (H * I_pad + I_pad * H) * cdt_size         # w1 + w2 re-streamed per token tile
        + n_m * I_pad * 4                                  # b1 (f32) per token tile
        + H * 4                                            # b2 (resident)
        + M_pad * H * out_size)                            # output
    cost = pl.CostEstimate(flops=flops, transcendentals=transcendentals,
                           bytes_accessed=bytes_accessed)

    scratch_shapes = [] if acc_in_out else [pltpu.VMEM((tm_eff, H), jnp.float32)]
    kernel = functools.partial(_mlp_kernel, acc_in_out=acc_in_out)

    out = pl.pallas_call(
        kernel,
        out_shape=jax.ShapeDtypeStruct((M_pad, H), out_dtype),
        grid_spec=pltpu.PrefetchScalarGridSpec(
            num_scalar_prefetch=0,
            grid=grid,
            in_specs=[
                pl.BlockSpec((tm_eff, H), lambda i, k: (i, 0)),            # x tile (resident over k)
                pl.BlockSpec((H, tk_eff), lambda i, k: (0, k), **w_pipe),  # w1 4H-slice (streamed)
                pl.BlockSpec((1, tk_eff), lambda i, k: (0, k)),            # b1 4H-slice
                pl.BlockSpec((tk_eff, H), lambda i, k: (k, 0), **w_pipe),  # w2 4H-slice (streamed)
                pl.BlockSpec((1, H), lambda i, k: (0, 0)),                 # b2 (constant)
            ],
            out_specs=pl.BlockSpec((tm_eff, H), lambda i, k: (i, 0)),
            scratch_shapes=scratch_shapes,
        ),
        compiler_params=pltpu.CompilerParams(
            dimension_semantics=("parallel", "arbitrary"),
            vmem_limit_bytes=int(vmem_limit),
        ),
        cost_estimate=cost,
    )(x, w1c, b1f, w2c, b2f)

    return out[:M].reshape(B, S, H)


if __name__ == "__main__":
    # Small shapes consistent with the module: batch=2, seq=8, hidden=32, inner=4*hidden=128
    B, S, H = 2, 8, 32
    I = 4 * H

    key = jax.random.PRNGKey(0)
    kx, kw1, kb1, kw2, kb2 = jax.random.split(key, 5)

    # Deterministic parameter init (normal * 0.02, like init_method=normal std=0.02)
    x = jax.random.normal(kx, (B, S, H), dtype=jnp.float32)
    w1 = jax.random.normal(kw1, (H, I), dtype=jnp.float32) * 0.02
    b1 = jax.random.normal(kb1, (1, I), dtype=jnp.float32) * 0.02
    w2 = jax.random.normal(kw2, (I, H), dtype=jnp.float32) * 0.02
    b2 = jax.random.normal(kb2, (1, H), dtype=jnp.float32) * 0.02

    # Pre-cast the weights to the MXU compute dtype ONCE (weight-stationary pattern) so the
    # kernel's in-jit .astype is a no-op and no per-call f32->bf16 weight re-cast hits HBM.
    w1_bf = w1.astype(jnp.bfloat16)
    w2_bf = w2.astype(jnp.bfloat16)

    out = mlp_forward(x, w1_bf, b1, w2_bf, b2)   # bf16 MXU compute, f32 accumulation
    out = jax.block_until_ready(out)

    # Pure-JAX reference mirroring the kernel's bf16 quantization (f32 math otherwise).
    xq = x.astype(jnp.bfloat16).astype(jnp.float32).reshape(-1, H)
    w1q = w1_bf.astype(jnp.float32)
    w2q = w2_bf.astype(jnp.float32)
    ref_h = _gelu_tanh(xq @ w1q + b1)
    ref_h = ref_h.astype(jnp.bfloat16).astype(jnp.float32)
    ref = (ref_h @ w2q + b2).reshape(B, S, H)
    assert jnp.allclose(out, ref, atol=2e-3, rtol=2e-2), "mismatch vs quantized reference"

    # Loose sanity check against the fully-f32 reference as well.
    ref_f32 = (_gelu_tanh(x.reshape(-1, H) @ w1 + b1) @ w2 + b2).reshape(B, S, H)
    assert jnp.allclose(out, ref_f32, atol=5e-3, rtol=5e-2), "mismatch vs f32 reference"

    # TODO(synk): training-mode dropout (output_dropout_prob) is not implemented; eval-mode forward only.
    print("KERNEL_OK")
</pallas_src>

<mosaic_0001>
module attributes {stable_mosaic.version = 11 : i64} {
  func.func @_mlp_kernel(%arg0: i32, %arg1: i32, %arg2: memref<16x32xbf16, #tpu.memory_space<vmem>>, %arg3: memref<32x128xbf16, #tpu.memory_space<vmem>>, %arg4: memref<1x128xf32, #tpu.memory_space<vmem>>, %arg5: memref<128x32xbf16, #tpu.memory_space<vmem>>, %arg6: memref<1x32xf32, #tpu.memory_space<vmem>>, %arg7: memref<16x32xf32, #tpu.memory_space<vmem>>) attributes {dimension_semantics = [#tpu.dimension_semantics<parallel>, #tpu.dimension_semantics<arbitrary>], iteration_bounds = array<i64: 1, 1>, scalar_prefetch = 0 : i64, scratch_operands = 0 : i64, tpu.core_type = #tpu.core_type<tc>, window_params = [{transform_indices = @transform_0, window_bounds = array<i64: 16, 32>}, {transform_indices = @transform_1, window_bounds = array<i64: 32, 128>}, {transform_indices = @transform_2, window_bounds = array<i64: 1, 128>}, {transform_indices = @transform_3, window_bounds = array<i64: 128, 32>}, {pipeline_mode = #tpu.pipeline_mode<synchronous>, transform_indices = @transform_4, window_bounds = array<i64: 1, 32>}, {transform_indices = @transform_5, window_bounds = array<i64: 16, 32>}]} {
    %c0_i32 = arith.constant 0 : i32
    %0 = arith.cmpi eq, %arg1, %c0_i32 : i32
    %1 = arith.extui %0 : i1 to i32
    %c0_i32_0 = arith.constant 0 : i32
    %2 = arith.cmpi ne, %1, %c0_i32_0 : i32
    scf.if %2 {
      %c0_18 = arith.constant 0 : index
      %c0_19 = arith.constant 0 : index
      %29 = vector.load %arg6[%c0_18, %c0_19] : memref<1x32xf32, #tpu.memory_space<vmem>>, vector<1x32xf32>
      %30 = vector.shape_cast %29 : vector<1x32xf32> to vector<1x32xf32>
      %31 = vector.broadcast %30 : vector<1x32xf32> to vector<16x32xf32>
      %c0_20 = arith.constant 0 : index
      %c0_21 = arith.constant 0 : index
      %32 = vector.load %arg7[%c0_20, %c0_21] : memref<16x32xf32, #tpu.memory_space<vmem>>, vector<16x32xf32>
      tpu.vector_store %arg7[%c0_20, %c0_21], %31 {strides = array<i32>} : memref<16x32xf32, #tpu.memory_space<vmem>>, vector<16x32xf32>,
    } else {
    }
    %c0 = arith.constant 0 : index
    %c0_1 = arith.constant 0 : index
    %3 = vector.load %arg2[%c0, %c0_1] : memref<16x32xbf16, #tpu.memory_space<vmem>>, vector<16x32xbf16>
    %c0_2 = arith.constant 0 : index
    %c0_3 = arith.constant 0 : index
    %4 = vector.load %arg3[%c0_2, %c0_3] : memref<32x128xbf16, #tpu.memory_space<vmem>>, vector<32x128xbf16>
    %cst = arith.constant dense<0.000000e+00> : vector<16x128xf32>
    %5 = tpu.matmul %3, %4, %cst {dimension_numbers = #tpu.dot_dimension_numbers<[1], [0], [0], [1], [0, 0, 1, 1], [], []>} : vector<16x32xbf16>, vector<32x128xbf16>, vector<16x128xf32> -> vector<16x128xf32>
    %c0_4 = arith.constant 0 : index
    %c0_5 = arith.constant 0 : index
    %6 = vector.load %arg4[%c0_4, %c0_5] : memref<1x128xf32, #tpu.memory_space<vmem>>, vector<1x128xf32>
    %7 = vector.broadcast %6 : vector<1x128xf32> to vector<16x128xf32>
    %8 = arith.addf %5, %7 : vector<16x128xf32>
    %cst_6 = arith.constant 5.000000e-01 : f32
    %9 = vector.broadcast %cst_6 : f32 to vector<16x128xf32>
    %10 = arith.mulf %9, %8 : vector<16x128xf32>
    %cst_7 = arith.constant 0.797884583 : f32
    %11 = vector.broadcast %cst_7 : f32 to vector<16x128xf32>
    %12 = arith.mulf %11, %8 : vector<16x128xf32>
    %cst_8 = arith.constant 4.471500e-02 : f32
    %13 = vector.broadcast %cst_8 : f32 to vector<16x128xf32>
    %14 = arith.mulf %13, %8 : vector<16x128xf32>
    %15 = arith.mulf %14, %8 : vector<16x128xf32>
    %cst_9 = arith.constant 1.000000e+00 : f32
    %16 = vector.broadcast %cst_9 : f32 to vector<16x128xf32>
    %17 = arith.addf %16, %15 : vector<16x128xf32>
    %18 = arith.mulf %12, %17 : vector<16x128xf32>
    %19 = math.tanh %18 : vector<16x128xf32>
    %cst_10 = arith.constant 1.000000e+00 : f32
    %20 = vector.broadcast %cst_10 : f32 to vector<16x128xf32>
    %21 = arith.addf %20, %19 : vector<16x128xf32>
    %22 = arith.mulf %10, %21 : vector<16x128xf32>
    %c0_11 = arith.constant 0 : index
    %c0_12 = arith.constant 0 : index
    %23 = vector.load %arg7[%c0_11, %c0_12] : memref<16x32xf32, #tpu.memory_space<vmem>>, vector<16x32xf32>
    %24 = arith.truncf %22 : vector<16x128xf32> to vector<16x128xbf16>
    %c0_13 = arith.constant 0 : index
    %c0_14 = arith.constant 0 : index
    %25 = vector.load %arg5[%c0_13, %c0_14] : memref<128x32xbf16, #tpu.memory_space<vmem>>, vector<128x32xbf16>
    %cst_15 = arith.constant dense<0.000000e+00> : vector<16x32xf32>
    %26 = tpu.matmul %24, %25, %cst_15 {dimension_numbers = #tpu.dot_dimension_numbers<[1], [0], [0], [1], [0, 0, 1, 1], [], []>} : vector<16x128xbf16>, vector<128x32xbf16>, vector<16x32xf32> -> vector<16x32xf32>
    %27 = arith.addf %23, %26 : vector<16x32xf32>
    %c0_16 = arith.constant 0 : index
    %c0_17 = arith.constant 0 : index
    %28 = vector.load %arg7[%c0_16, %c0_17] : memref<16x32xf32, #tpu.memory_space<vmem>>, vector<16x32xf32>
    tpu.vector_store %arg7[%c0_16, %c0_17], %27 {strides = array<i32>} : memref<16x32xf32, #tpu.memory_space<vmem>>, vector<16x32xf32>,
    return
  }
  func.func @transform_0(%arg0: i32, %arg1: i32) -> (i32, i32) {
    %c0_i32 = arith.constant 0 : i32
    %c0_i32_0 = arith.constant 0 : i32
    return %arg0, %c0_i32 : i32, i32
  }
  func.func @transform_1(%arg0: i32, %arg1: i32) -> (i32, i32) {
    %c0_i32 = arith.constant 0 : i32
    %c0_i32_0 = arith.constant 0 : i32
    return %c0_i32, %arg1 : i32, i32
  }
  func.func @transform_2(%arg0: i32, %arg1: i32) -> (i32, i32) {
    %c0_i32 = arith.constant 0 : i32
    %c0_i32_0 = arith.constant 0 : i32
    return %c0_i32, %arg1 : i32, i32
  }
  func.func @transform_3(%arg0: i32, %arg1: i32) -> (i32, i32) {
    %c0_i32 = arith.constant 0 : i32
    %c0_i32_0 = arith.constant 0 : i32
    return %arg1, %c0_i32 : i32, i32
  }
  func.func @transform_4(%arg0: i32, %arg1: i32) -> (i32, i32) {
    %c0_i32 = arith.constant 0 : i32
    %c0_i32_0 = arith.constant 0 : i32
    %c0_i32_1 = arith.constant 0 : i32
    return %c0_i32, %c0_i32_0 : i32, i32
  }
  func.func @transform_5(%arg0: i32, %arg1: i32) -> (i32, i32) {
    %c0_i32 = arith.constant 0 : i32
    %c0_i32_0 = arith.constant 0 : i32
    return %arg0, %c0_i32 : i32, i32
  }
}

</mosaic_0001>

<bundles_post_ra>
// kernel: mlp_forward.1
= control target key start
LH: loop header
LB: loop body
LE: loop exit
PB: predicated region body
PF: predicated region fallthrough
CT: control target
= control target key end

     0   :  { %s370_s0 = inlined_call_operand.vmem [shape: bf16[16,32], index: 0, kind: input, shape index: {}]   ;;  %s371_s1 = inlined_call_operand.vmem [shape: bf16[32,128], index: 1, kind: input, shape index: {}]   ;;  %s372_s2 = inlined_call_operand.vmem [shape: f32[1,128], index: 2, kind: input, shape index: {}]   ;;  %s373_s3 = inlined_call_operand.vmem [shape: bf16[128,32], index: 3, kind: input, shape index: {}]   ;;  %s374_s4 = inlined_call_operand.vmem [shape: f32[1,32], index: 4, kind: input, shape index: {}]   ;;  %s375_s5 = inlined_call_operand.hbm [shape: f32[16,32], index: 5, kind: output, shape index: {}]  }
   0x1   :  { %v246_v0 = vld [vmem:[%s371_s1 + $0x8] sm:$0xff]  ;;  %v245_v1 = vld [vmem:[%s371_s1] sm:$0xff] }
   0x2   :  { %70 = vmatpush.bf16.msra.mxu0 %v246_v0 }
   0x3   :  { %10 = vsyncpa [#allocation3], 0  ;;  %v244_v2 = vld [vmem:[%s370_s0] sm:$0xff]  ;;  %vm30_vm0 = vcmask 261120   ;;  %v254_v3 = vld [vmem:[%s373_s3 + $0x38] sm:$0xff]  ;;  %s187_s18 = sshll.u32 %s375_s5, 4  ;;  %s188_s18 = int_to_ptr.hbm [resolvable:$true] %s187_s18 }
   0x4   :  { %163 = vmatpush.bf16.msra.mxu1 %v254_v3  ;;  %v253_v4 = vld [vmem:[%s373_s3 + $0x30] sm:$0xff]  ;;  %v252_v5 = vld [vmem:[%s373_s3 + $0x28] sm:$0xff]  ;;  %v251_v6 = vld [vmem:[%s373_s3 + $0x20] sm:$0xff]  ;;  %s291_s19 = smov 128   ;;  %s292_s20 = smov 8  }
   0x5   :  { %v250_v7 = vld [vmem:[%s373_s3 + $0x18] sm:$0xff]  ;;  %v249_v8 = vld [vmem:[%s373_s3 + $0x10] sm:$0xff]  ;;  %v248_v9 = vld [vmem:[%s373_s3 + $0x8] sm:$0xff] }
   0x6   :  { %71 = vmatpush.bf16.msra.mxu0 %v245_v1  ;;  %v247_v10 = vld [vmem:[%s373_s3] sm:$0xff] }
   0x7   :  { %v258_v11 = vld [vmem:[%s372_s2] ss:$0 sm:$0xff]  ;;  %s290_s2 = smov [#allocation2]  }
   0x8   :  { %164 = vmatpush.bf16.msra.mxu1 %v253_v4  ;;  %v259_v13 = vld [vmem:[%s374_s4] ss:$0 sm:$0xff]  ;;  %s185_s3 = sshll.u32 %s290_s2, 4  ;;  %s186_s3 = int_to_ptr.vmem [resolvable:$true] %s185_s3 }
   0x9   :  { %211 = vmatmul.msk.bf16.vlgmr.msra.gmra.mxu0 %vm30_vm0, %v244_v2  ;;  %31 = vst.msk [vmem:[#allocation2] sm:$0xff] %vm30_vm0, %v259_v13 }
   0xa   :  { %32 = vst.msk [vmem:[#allocation2 + $0x8] sm:$0xff] %vm30_vm0, %v259_v13 }
   0xc   :  { %165 = vmatpush.bf16.msra.mxu1 %v252_v5 }
  0x10   :  { %166 = vmatpush.bf16.msra.mxu1 %v251_v6  ;;  %v96_v36 = vld [vmem:[#allocation2] sm:$0xff] }
  0x11   :  { %v97_v39 = vld [vmem:[#allocation2 + $0x8] sm:$0xff] }
  0x14   :  { %167 = vmatpush.bf16.msra.mxu1 %v250_v7 }
  0x18   :  { %168 = vmatpush.bf16.msra.mxu1 %v249_v8 }
  0x1c   :  { %169 = vmatpush.bf16.msra.mxu1 %v248_v9 }
  0x20   :  { %170 = vmatpush.bf16.msra.mxu1 %v247_v10 }
  0x86   :  { %v73_v12 = vpop.f32.mrf.mxu0 }
  0x87   :  { %v74_v14 = vadd.f32 %v258_v11, %v73_v12 }
  0x89   :  { %v82_v15 = vmul.f32 0.044715, %v74_v14  ;;  %v80_v19 = vmul.f32 0.7978846, %v74_v14  ;;  %v78_v30 = vmul.f32 0.5, %v74_v14 }
  0x8b   :  { %v84_v16 = vmul.f32 %v82_v15, %v74_v14 }
  0x8d   :  { %v86_v17 = vadd.f32 1.0, %v84_v16 }
  0x8e   :  { %v75_v18 = vpop.f32.mrf.mxu0 }
  0x8f   :  { %v76_v20 = vadd.f32 %v258_v11, %v75_v18  ;;  %v88_v22 = vmul.f32 %v86_v17, %v80_v19 }
  0x91   :  { %v83_v21 = vmul.f32 0.044715, %v76_v20  ;;  %v81_v24 = vmul.f32 0.7978846, %v76_v20  ;;  %260 = vtanh.f32 %v88_v22  ;;  %v79_v31 = vmul.f32 0.5, %v76_v20 }
  0x93   :  { %v85_v23 = vmul.f32 %v83_v21, %v76_v20 }
  0x95   :  { %v87_v25 = vadd.f32 1.0, %v85_v23 }
  0x97   :  { %v89_v26 = vmul.f32 %v87_v25, %v81_v24  ;;  %v261_v27 = vpop.eup %260 }
  0x98   :  { %v92_v28 = vadd.f32 1.0, %v261_v27 }
  0x99   :  { %262 = vtanh.f32 %v89_v26 }
  0x9a   :  { %v94_v33 = vmul.f32 %v92_v28, %v78_v30 }
  0x9f   :  { %v263_v29 = vpop.eup %262 }
  0xa0   :  { %v93_v32 = vadd.f32 1.0, %v263_v29 }
  0xa2   :  { %v95_v34 = vmul.f32 %v93_v32, %v79_v31 }
  0xa4   :  { %v98_v35 = vpack.c.bf16 %v95_v34, %v94_v33 }
  0xa6   :  { %171 = vmatmul.bf16.vlgmr.msra.gmra.mxu1 %v98_v35 }
 0x123   :  { %v172_v37 = vpop.f32.mrf.mxu1 }
 0x124   :  { %v177_v38 = vadd.f32 %v172_v37, %v96_v36 }
 0x126   :  { %179 = vst.msk [vmem:[#allocation2] sm:$0xff] %vm30_vm0, %v177_v38 }
 0x12b   :  { %v174_v40 = vpop.f32.mrf.mxu1 }
 0x12c   :  { %v178_v41 = vadd.f32 %v174_v40, %v97_v39 }
 0x12e   :  { %180 = vst.msk [vmem:[#allocation2 + $0x8] sm:$0xff] %vm30_vm0, %v178_v41 }
 0x12f   :  { %193 = dma.vmem_to_hbm [thread:$0]  %s186_s3, 256, %s188_s18, [#allocation3], %s291_s19, %s291_s19, %s292_s20  }
 0x130   :  { %288 = dma.done.wait [#allocation3], 256  }
 0x131   :  { %289 = vsyncadd [#allocation3], 4294967040 }
 0x132   :  { %198 = vsyncpa [#allocation3], 1 }

</bundles_post_ra>
